<compile_context>
chip_gen: v6e
topology: v6e:2x2x1
jax: 0.10.0
libtpu: 0.0.40
codegen_flags: <defaults>
</compile_context>

<pallas_src>
import functools
import math

import jax
import jax.numpy as jnp
from jax.experimental import pallas as pl
from jax.experimental.pallas import tpu as pltpu


def _round_up(x, m):
    return ((x + m - 1) // m) * m


def _partials_kernel(x_ref, y_ref, inter_ref, m1_ref, m2_ref, bce_ref,
                     *, tile_d, d_valid, needs_mask):
    """Accumulate lane-wide (row_block, 128) partial sums across the lane grid axis."""
    i = pl.program_id(1)

    @pl.when(i == 0)
    def _init():
        inter_ref[...] = jnp.zeros_like(inter_ref)
        m1_ref[...] = jnp.zeros_like(m1_ref)
        m2_ref[...] = jnp.zeros_like(m2_ref)
        bce_ref[...] = jnp.zeros_like(bce_ref)

    x = x_ref[...].astype(jnp.float32)   # (row_block, tile_d)
    y = y_ref[...].astype(jnp.float32)

    p = jax.nn.sigmoid(x)
    # Numerically-stable BCEWithLogits, reusing the sigmoid to save one EUP exp:
    #   max(x,0) - x*y + log1p(exp(-|x|))  with  log1p(exp(-|x|)) == -log(where(x>=0, p, 1-p))
    bce = jnp.maximum(x, 0.0) - x * y - jnp.log(jnp.where(x >= 0.0, p, 1.0 - p))

    if needs_mask:
        # Lane padding must not leak into sum(p) (sigmoid(0)=0.5) or the BCE sum.
        col = i * tile_d + jax.lax.broadcasted_iota(jnp.int32, x.shape, 1)
        valid = col < d_valid
        p = jnp.where(valid, p, 0.0)
        bce = jnp.where(valid, bce, 0.0)
        # targets are zero-padded, so inter / m2 need no masking.

    # Fold lane chunks onto a single 128-wide column with pure VALU adds; the one
    # cross-lane (XLU) reduction happens once, in the JAX epilogue.
    n_chunks = tile_d // 128

    def fold(v):
        s = v[:, 0:128]
        for j in range(1, n_chunks):
            s = s + v[:, j * 128:(j + 1) * 128]
        return s

    inter_ref[...] += fold(p * y)
    m1_ref[...] += fold(p)
    m2_ref[...] += fold(y)
    bce_ref[...] += fold(bce)


def soft_dice_bce_loss(logits, targets, *, smooth=0.7, tile_d=2048):
    """logits, targets: arrays of identical shape [N, ...]. Returns scalar f32 loss."""
    n = logits.shape[0]
    d = 1
    for s in logits.shape[1:]:
        d *= s

    # Fill sublanes for small batches: [N, D] -> [N*R, D/R] with (N*R) % 8 == 0.
    r = 8 // math.gcd(n, 8)
    if d % r != 0:
        r = 1
    rows = n * r
    d_rows = d // r

    logits2d = logits.reshape(rows, d_rows)
    targets2d = targets.reshape(rows, d_rows)

    # Lane tiling: multiples of 128; pad the lane axis so the grid divides evenly.
    tile_d = max(128, (int(tile_d) // 128) * 128)
    tile_d = min(tile_d, _round_up(d_rows, 128))
    d_padded = _round_up(d_rows, tile_d)
    needs_mask = d_padded != d_rows
    if needs_mask:
        pad = d_padded - d_rows
        logits2d = jnp.pad(logits2d, ((0, 0), (0, pad)))
        targets2d = jnp.pad(targets2d, ((0, 0), (0, pad)))

    row_block = 8 if rows % 8 == 0 else rows
    grid = (rows // row_block, d_padded // tile_d)

    kernel = functools.partial(
        _partials_kernel, tile_d=tile_d, d_valid=d_rows, needs_mask=needs_mask)

    part_shape = jax.ShapeDtypeStruct((rows, 128), jnp.float32)
    part_spec = pl.BlockSpec((row_block, 128), lambda rb, i: (rb, 0))
    in_spec = pl.BlockSpec((row_block, tile_d), lambda rb, i: (rb, i))

    inter_p, m1_p, m2_p, bce_p = pl.pallas_call(
        kernel,
        out_shape=(part_shape, part_shape, part_shape, part_shape),
        grid=grid,
        in_specs=[in_spec, in_spec],
        out_specs=(part_spec, part_spec, part_spec, part_spec),
        compiler_params=pltpu.CompilerParams(
            dimension_semantics=("parallel", "arbitrary")),
    )(logits2d, targets2d)

    # Tiny epilogue in plain XLA: cross-lane reduce, fold row groups back to samples,
    # then the dice / BCE scalar combine (exactly the PyTorch forward).
    inter = inter_p.sum(axis=1).reshape(n, r).sum(axis=1)
    m1 = m1_p.sum(axis=1).reshape(n, r).sum(axis=1)
    m2 = m2_p.sum(axis=1).reshape(n, r).sum(axis=1)
    bce_sum = bce_p.sum()

    score = 2.0 * (inter + smooth) / (m1 + m2 + smooth)
    dice_loss = 1.0 - jnp.sum(score) / n
    bce_loss = bce_sum / (n * d)
    return dice_loss * 0.5 + bce_loss * 0.5


def _reference(logits, targets, smooth=0.7):
    n = logits.shape[0]
    x = logits.reshape(n, -1).astype(jnp.float32)
    y = targets.reshape(n, -1).astype(jnp.float32)
    p = jax.nn.sigmoid(x)
    inter = jnp.sum(p * y, axis=1)
    score = 2.0 * (inter + smooth) / (jnp.sum(p, axis=1) + jnp.sum(y, axis=1) + smooth)
    dice = 1.0 - jnp.sum(score) / n
    bce = jnp.mean(jnp.maximum(x, 0.0) - x * y + jnp.log1p(jnp.exp(-jnp.abs(x))))
    return dice / 2 + bce / 2


if __name__ == "__main__":
    key = jax.random.PRNGKey(0)
    k1, k2 = jax.random.split(key)
    # Small NCHW shapes consistent with a segmentation loss: [2, 4, 16, 16]
    logits = jax.random.normal(k1, (2, 4, 16, 16), dtype=jnp.float32)
    targets = (jax.random.uniform(k2, (2, 4, 16, 16)) > 0.5).astype(jnp.float32)

    loss = soft_dice_bce_loss(logits, targets, smooth=0.7)
    loss = jax.block_until_ready(loss)

    ref = _reference(logits, targets, smooth=0.7)
    assert jnp.allclose(loss, ref, rtol=1e-4, atol=1e-4), (loss, ref)
    print("KERNEL_OK")
</pallas_src>

<mosaic_0001>
module attributes {stable_mosaic.version = 11 : i64} {
  func.func @_partials_kernel(%arg0: i32, %arg1: i32, %arg2: memref<8x256xf32, #tpu.memory_space<vmem>>, %arg3: memref<8x256xf32, #tpu.memory_space<vmem>>, %arg4: memref<8x128xf32, #tpu.memory_space<vmem>>, %arg5: memref<8x128xf32, #tpu.memory_space<vmem>>, %arg6: memref<8x128xf32, #tpu.memory_space<vmem>>, %arg7: memref<8x128xf32, #tpu.memory_space<vmem>>) attributes {dimension_semantics = [#tpu.dimension_semantics<parallel>, #tpu.dimension_semantics<arbitrary>], iteration_bounds = array<i64: 1, 1>, scalar_prefetch = 0 : i64, scratch_operands = 0 : i64, tpu.core_type = #tpu.core_type<tc>, window_params = [{transform_indices = @transform_0, window_bounds = array<i64: 8, 256>}, {transform_indices = @transform_1, window_bounds = array<i64: 8, 256>}, {transform_indices = @transform_2, window_bounds = array<i64: 8, 128>}, {transform_indices = @transform_3, window_bounds = array<i64: 8, 128>}, {transform_indices = @transform_4, window_bounds = array<i64: 8, 128>}, {transform_indices = @transform_5, window_bounds = array<i64: 8, 128>}]} {
    %c0_i32 = arith.constant 0 : i32
    %0 = arith.cmpi eq, %arg1, %c0_i32 : i32
    %1 = arith.extui %0 : i1 to i32
    %c0_i32_0 = arith.constant 0 : i32
    %2 = arith.cmpi ne, %1, %c0_i32_0 : i32
    scf.if %2 {
      %cst_23 = arith.constant 0.000000e+00 : f32
      %46 = vector.broadcast %cst_23 : f32 to vector<8x128xf32>
      %c0_24 = arith.constant 0 : index
      %c0_25 = arith.constant 0 : index
      %47 = vector.load %arg4[%c0_24, %c0_25] : memref<8x128xf32, #tpu.memory_space<vmem>>, vector<8x128xf32>
      tpu.vector_store %arg4[%c0_24, %c0_25], %46 {strides = array<i32>} : memref<8x128xf32, #tpu.memory_space<vmem>>, vector<8x128xf32>,
      %cst_26 = arith.constant 0.000000e+00 : f32
      %48 = vector.broadcast %cst_26 : f32 to vector<8x128xf32>
      %c0_27 = arith.constant 0 : index
      %c0_28 = arith.constant 0 : index
      %49 = vector.load %arg5[%c0_27, %c0_28] : memref<8x128xf32, #tpu.memory_space<vmem>>, vector<8x128xf32>
      tpu.vector_store %arg5[%c0_27, %c0_28], %48 {strides = array<i32>} : memref<8x128xf32, #tpu.memory_space<vmem>>, vector<8x128xf32>,
      %cst_29 = arith.constant 0.000000e+00 : f32
      %50 = vector.broadcast %cst_29 : f32 to vector<8x128xf32>
      %c0_30 = arith.constant 0 : index
      %c0_31 = arith.constant 0 : index
      %51 = vector.load %arg6[%c0_30, %c0_31] : memref<8x128xf32, #tpu.memory_space<vmem>>, vector<8x128xf32>
      tpu.vector_store %arg6[%c0_30, %c0_31], %50 {strides = array<i32>} : memref<8x128xf32, #tpu.memory_space<vmem>>, vector<8x128xf32>,
      %cst_32 = arith.constant 0.000000e+00 : f32
      %52 = vector.broadcast %cst_32 : f32 to vector<8x128xf32>
      %c0_33 = arith.constant 0 : index
      %c0_34 = arith.constant 0 : index
      %53 = vector.load %arg7[%c0_33, %c0_34] : memref<8x128xf32, #tpu.memory_space<vmem>>, vector<8x128xf32>
      tpu.vector_store %arg7[%c0_33, %c0_34], %52 {strides = array<i32>} : memref<8x128xf32, #tpu.memory_space<vmem>>, vector<8x128xf32>,
    } else {
    }
    %c0 = arith.constant 0 : index
    %c0_1 = arith.constant 0 : index
    %3 = vector.load %arg2[%c0, %c0_1] : memref<8x256xf32, #tpu.memory_space<vmem>>, vector<8x256xf32>
    %c0_2 = arith.constant 0 : index
    %c0_3 = arith.constant 0 : index
    %4 = vector.load %arg3[%c0_2, %c0_3] : memref<8x256xf32, #tpu.memory_space<vmem>>, vector<8x256xf32>
    %5 = arith.negf %3 : vector<8x256xf32>
    %6 = math.exp %5 : vector<8x256xf32>
    %cst = arith.constant 1.000000e+00 : f32
    %7 = vector.broadcast %cst : f32 to vector<8x256xf32>
    %8 = arith.addf %7, %6 : vector<8x256xf32>
    %9 = arith.divf %7, %8 : vector<8x256xf32>
    %cst_4 = arith.constant 0.000000e+00 : f32
    %10 = vector.broadcast %cst_4 : f32 to vector<8x256xf32>
    %11 = arith.maximumf %3, %10 : vector<8x256xf32>
    %12 = arith.mulf %3, %4 : vector<8x256xf32>
    %13 = arith.subf %11, %12 : vector<8x256xf32>
    %cst_5 = arith.constant 0.000000e+00 : f32
    %14 = vector.broadcast %cst_5 : f32 to vector<8x256xf32>
    %15 = arith.cmpf oge, %3, %14 : vector<8x256xf32>
    %cst_6 = arith.constant 1.000000e+00 : f32
    %16 = vector.broadcast %cst_6 : f32 to vector<8x256xf32>
    %17 = arith.subf %16, %9 : vector<8x256xf32>
    %18 = arith.select %15, %9, %17 : vector<8x256xi1>, vector<8x256xf32>
    %19 = math.log %18 : vector<8x256xf32>
    %20 = arith.subf %13, %19 : vector<8x256xf32>
    %c0_7 = arith.constant 0 : index
    %c0_8 = arith.constant 0 : index
    %21 = vector.load %arg4[%c0_7, %c0_8] : memref<8x128xf32, #tpu.memory_space<vmem>>, vector<8x128xf32>
    %22 = arith.mulf %9, %4 : vector<8x256xf32>
    %23 = vector.extract_strided_slice %22 {offsets = [0, 0], sizes = [8, 128], strides = [1, 1]} : vector<8x256xf32> to vector<8x128xf32>
    %24 = vector.extract_strided_slice %22 {offsets = [0, 128], sizes = [8, 128], strides = [1, 1]} : vector<8x256xf32> to vector<8x128xf32>
    %25 = arith.addf %23, %24 : vector<8x128xf32>
    %26 = arith.addf %21, %25 : vector<8x128xf32>
    %c0_9 = arith.constant 0 : index
    %c0_10 = arith.constant 0 : index
    %27 = vector.load %arg4[%c0_9, %c0_10] : memref<8x128xf32, #tpu.memory_space<vmem>>, vector<8x128xf32>
    tpu.vector_store %arg4[%c0_9, %c0_10], %26 {strides = array<i32>} : memref<8x128xf32, #tpu.memory_space<vmem>>, vector<8x128xf32>,
    %c0_11 = arith.constant 0 : index
    %c0_12 = arith.constant 0 : index
    %28 = vector.load %arg5[%c0_11, %c0_12] : memref<8x128xf32, #tpu.memory_space<vmem>>, vector<8x128xf32>
    %29 = vector.extract_strided_slice %9 {offsets = [0, 0], sizes = [8, 128], strides = [1, 1]} : vector<8x256xf32> to vector<8x128xf32>
    %30 = vector.extract_strided_slice %9 {offsets = [0, 128], sizes = [8, 128], strides = [1, 1]} : vector<8x256xf32> to vector<8x128xf32>
    %31 = arith.addf %29, %30 : vector<8x128xf32>
    %32 = arith.addf %28, %31 : vector<8x128xf32>
    %c0_13 = arith.constant 0 : index
    %c0_14 = arith.constant 0 : index
    %33 = vector.load %arg5[%c0_13, %c0_14] : memref<8x128xf32, #tpu.memory_space<vmem>>, vector<8x128xf32>
    tpu.vector_store %arg5[%c0_13, %c0_14], %32 {strides = array<i32>} : memref<8x128xf32, #tpu.memory_space<vmem>>, vector<8x128xf32>,
    %c0_15 = arith.constant 0 : index
    %c0_16 = arith.constant 0 : index
    %34 = vector.load %arg6[%c0_15, %c0_16] : memref<8x128xf32, #tpu.memory_space<vmem>>, vector<8x128xf32>
    %35 = vector.extract_strided_slice %4 {offsets = [0, 0], sizes = [8, 128], strides = [1, 1]} : vector<8x256xf32> to vector<8x128xf32>
    %36 = vector.extract_strided_slice %4 {offsets = [0, 128], sizes = [8, 128], strides = [1, 1]} : vector<8x256xf32> to vector<8x128xf32>
    %37 = arith.addf %35, %36 : vector<8x128xf32>
    %38 = arith.addf %34, %37 : vector<8x128xf32>
    %c0_17 = arith.constant 0 : index
    %c0_18 = arith.constant 0 : index
    %39 = vector.load %arg6[%c0_17, %c0_18] : memref<8x128xf32, #tpu.memory_space<vmem>>, vector<8x128xf32>
    tpu.vector_store %arg6[%c0_17, %c0_18], %38 {strides = array<i32>} : memref<8x128xf32, #tpu.memory_space<vmem>>, vector<8x128xf32>,
    %c0_19 = arith.constant 0 : index
    %c0_20 = arith.constant 0 : index
    %40 = vector.load %arg7[%c0_19, %c0_20] : memref<8x128xf32, #tpu.memory_space<vmem>>, vector<8x128xf32>
    %41 = vector.extract_strided_slice %20 {offsets = [0, 0], sizes = [8, 128], strides = [1, 1]} : vector<8x256xf32> to vector<8x128xf32>
    %42 = vector.extract_strided_slice %20 {offsets = [0, 128], sizes = [8, 128], strides = [1, 1]} : vector<8x256xf32> to vector<8x128xf32>
    %43 = arith.addf %41, %42 : vector<8x128xf32>
    %44 = arith.addf %40, %43 : vector<8x128xf32>
    %c0_21 = arith.constant 0 : index
    %c0_22 = arith.constant 0 : index
    %45 = vector.load %arg7[%c0_21, %c0_22] : memref<8x128xf32, #tpu.memory_space<vmem>>, vector<8x128xf32>
    tpu.vector_store %arg7[%c0_21, %c0_22], %44 {strides = array<i32>} : memref<8x128xf32, #tpu.memory_space<vmem>>, vector<8x128xf32>,
    return
  }
  func.func @transform_0(%arg0: i32, %arg1: i32) -> (i32, i32) {
    %c0_i32 = arith.constant 0 : i32
    return %arg0, %arg1 : i32, i32
  }
  func.func @transform_1(%arg0: i32, %arg1: i32) -> (i32, i32) {
    %c0_i32 = arith.constant 0 : i32
    return %arg0, %arg1 : i32, i32
  }
  func.func @transform_2(%arg0: i32, %arg1: i32) -> (i32, i32) {
    %c0_i32 = arith.constant 0 : i32
    %c0_i32_0 = arith.constant 0 : i32
    return %arg0, %c0_i32 : i32, i32
  }
  func.func @transform_3(%arg0: i32, %arg1: i32) -> (i32, i32) {
    %c0_i32 = arith.constant 0 : i32
    %c0_i32_0 = arith.constant 0 : i32
    return %arg0, %c0_i32 : i32, i32
  }
  func.func @transform_4(%arg0: i32, %arg1: i32) -> (i32, i32) {
    %c0_i32 = arith.constant 0 : i32
    %c0_i32_0 = arith.constant 0 : i32
    return %arg0, %c0_i32 : i32, i32
  }
  func.func @transform_5(%arg0: i32, %arg1: i32) -> (i32, i32) {
    %c0_i32 = arith.constant 0 : i32
    %c0_i32_0 = arith.constant 0 : i32
    return %arg0, %c0_i32 : i32, i32
  }
}

</mosaic_0001>

<bundles_post_ra>
// kernel: tpu_custom_call.1
= control target key start
LH: loop header
LB: loop body
LE: loop exit
PB: predicated region body
PF: predicated region fallthrough
CT: control target
= control target key end

     0   :  { %11 = vsyncpa [#allocation3], 0  ;;  %s381_s0 = inlined_call_operand.hbm [shape: f32[8,256], index: 0, kind: input, shape index: {}]   ;;  %s382_s1 = inlined_call_operand.hbm [shape: f32[8,256], index: 1, kind: input, shape index: {}]   ;;  %s383_s2 = inlined_call_operand.hbm [shape: f32[8,128], index: 2, kind: output, shape index: {0}]   ;;  %s384_s3 = inlined_call_operand.hbm [shape: f32[8,128], index: 3, kind: output, shape index: {1}]   ;;  %s385_s4 = inlined_call_operand.hbm [shape: f32[8,128], index: 4, kind: output, shape index: {2}]   ;;  %s386_s5 = inlined_call_operand.hbm [shape: f32[8,128], index: 5, kind: output, shape index: {3}]  }
   0x1   :  { %12 = vsyncpa [#allocation6], 0 }
   0x2   :  { %13 = vsyncpa [#allocation4], 0 }
   0x3   :  { %14 = vsyncpa [#allocation9], 0 }
   0x4   :  { %15 = vsyncpa [#allocation12], 0  ;;  %s310_s18 = smov [#allocation2]   ;;  %s311_s20 = smov [#allocation5]  }
   0x5   :  { %s22_s19 = sshll.u32 %s310_s18, 4  ;;  %s32_s21 = sshll.u32 %s311_s20, 4  ;;  %s23_s19 = int_to_ptr.vmem [resolvable:$true] %s22_s19  ;;  %s33_s21 = int_to_ptr.vmem [resolvable:$true] %s32_s21 }
   0x6   :  { %s188_s22 = scalar_lea.vmem %s23_s19, 256  ;;  %p193_p1 = scmp.lt.s32.totalorder %s23_s19, %s23_s19 }
   0x7   :  { %p189_p0 = scmp.ne.s32.totalorder %s23_s19, %s188_s22  ;;  %p194_p2 = scmp.lt.s32.totalorder %s188_s22, %s188_s22 }
   0x9   :  { %p195_p3 = por %p194_p2, %p193_p1 }
   0xb   :  { %p196_p4 = pnand %p195_p3, %p189_p0 }
   0xd   :  { %199 = shalt.err (!%p196_p4)
}
   0xe   :  { %25 = dma.hbm_to_vmem [thread:$0]  %s381_s0, 256, %s23_s19, [#allocation3]  }
   0xf   :  { %s208_s25 = scalar_lea.vmem %s33_s21, 256  ;;  %p213_p6 = scmp.lt.s32.totalorder %s33_s21, %s33_s21 }
  0x10   :  { %p209_p5 = scmp.ne.s32.totalorder %s33_s21, %s208_s25  ;;  %p214_p7 = scmp.lt.s32.totalorder %s208_s25, %s208_s25 }
  0x12   :  { %p215_p8 = por %p214_p7, %p213_p6 }
  0x14   :  { %p216_p9 = pnand %p215_p8, %p209_p5 }
  0x16   :  { %219 = shalt.err (!%p216_p9)
}
  0x17   :  { %35 = dma.hbm_to_vmem [thread:$0]  %s382_s1, 256, %s33_s21, [#allocation6]  }
  0x18   :  { %300 = dma.done.wait [#allocation3], 256  }
  0x19   :  { %301 = vsyncadd [#allocation3], 4294967040 }
  0x1a   :  { %302 = dma.done.wait [#allocation6], 256  }
  0x1b   :  { %303 = vsyncadd [#allocation6], 4294967040  ;;  %v352_v0 = vld [vmem:[#allocation2] sm:$0xff]  ;;  %v354_v1 = vld [vmem:[#allocation2 + $0x8] sm:$0xff]  ;;  %s312_s0 = smov [#allocation8]   ;;  %s313_s28 = smov [#allocation10]  }
  0x1c   :  { %v159_v2 = vmul.f32 -1.442695, %v352_v0  ;;  %v160_v3 = vmul.f32 -1.442695, %v354_v1  ;;  %v52_v4 = vld [vmem:[#allocation5] sm:$0xff]  ;;  %v358_v5 = vld [vmem:[#allocation5 + $0x8] sm:$0xff] }
  0x1d   :  { %v95_v6 = vadd.f32 %v358_v5, %v52_v4  ;;  %vm72_vm0 = vcmp.ge.f32.partialorder %v352_v0, 0.0  ;;  %vm73_vm1 = vcmp.ge.f32.partialorder %v354_v1, 0.0  ;;  %s118_s1 = sshll.u32 %s312_s0, 4  ;;  %s128_s29 = sshll.u32 %s313_s28, 4  ;;  %s119_s1 = int_to_ptr.vmem [resolvable:$true] %s118_s1  ;;  %s129_s29 = int_to_ptr.vmem [resolvable:$true] %s128_s29 }
  0x1e   :  { %168 = vpow2.f32 %v159_v2  ;;  %s314_s30 = smov [#allocation7]   ;;  %s220_s7 = scalar_lea.vmem %s119_s1, 128 }
  0x1f   :  { %170 = vpow2.f32 %v160_v3  ;;  %97 = vst [vmem:[#allocation10] sm:$0xff] %v95_v6  ;;  %s108_s6 = sshll.u32 %s314_s30, 4  ;;  %p221_p10 = scmp.ne.s32.totalorder %s119_s1, %s220_s7  ;;  %s109_s6 = int_to_ptr.vmem [resolvable:$true] %s108_s6 }
  0x20   :  { %p225_p11 = scmp.lt.s32.totalorder %s119_s1, %s119_s1  ;;  %p226_p12 = scmp.lt.s32.totalorder %s220_s7, %s220_s7 }
  0x22   :  { %p227_p13 = por %p226_p12, %p225_p11 }
  0x24   :  { %p228_p0 = pnand %p227_p13, %p221_p10 }
  0x2b   :  { %v169_v7 = vpop.eup %168 }
  0x2c   :  { %v171_v8 = vpop.eup %170  ;;  %v60_v9 = vadd.f32 1.0, %v169_v7 }
  0x2d   :  { %v61_v10 = vadd.f32 1.0, %v171_v8 }
  0x2e   :  { %172 = vrcp.f32 %v60_v9 }
  0x2f   :  { %174 = vrcp.f32 %v61_v10 }
  0x3b   :  { %v173_v11 = vpop.eup %172 }
  0x3c   :  { %v175_v12 = vpop.eup %174  ;;  %v85_v13 = vmul.f32 %v173_v11, %v52_v4  ;;  %v74_v14 = vsub.f32 1.0, %v173_v11 }
  0x3d   :  { %v91_v15 = vadd.f32 %v175_v12, %v173_v11  ;;  %v86_v16 = vmul.f32 %v175_v12, %v358_v5  ;;  %v75_v17 = vsub.f32 1.0, %v175_v12 }
  0x3e   :  { %v76_v18 = vsel %vm72_vm0, %v173_v11, %v74_v14 }
  0x3f   :  { %v87_v19 = vadd.f32 %v86_v16, %v85_v13  ;;  %v77_v20 = vsel %vm73_vm1, %v175_v12, %v75_v17  ;;  %176 = vlog2.f32 %v76_v18  ;;  %93 = vst [vmem:[#allocation8] sm:$0xff] %v91_v15 }
  0x40   :  { %178 = vlog2.f32 %v77_v20 }
  0x41   :  { %231 = shalt.err (!%p228_p0)
}
  0x42   :  { %121 = dma.vmem_to_hbm [thread:$0]  %s119_s1, 128, %s384_s3, [#allocation9]   ;;  %89 = vst [vmem:[#allocation7] sm:$0xff] %v87_v19 }
  0x43   :  { %s240_s10 = scalar_lea.vmem %s129_s29, 128  ;;  %p245_p2 = scmp.lt.s32.totalorder %s129_s29, %s129_s29 }
  0x44   :  { %p241_p1 = scmp.ne.s32.totalorder %s129_s29, %s240_s10  ;;  %p246_p3 = scmp.lt.s32.totalorder %s240_s10, %s240_s10 }
  0x46   :  { %p247_p4 = por %p246_p3, %p245_p2 }
  0x48   :  { %p248_p5 = pnand %p247_p4, %p241_p1 }
  0x4a   :  { %251 = shalt.err (!%p248_p5)
}
  0x4b   :  { %131 = dma.vmem_to_hbm [thread:$0]  %s129_s29, 128, %s385_s4, [#allocation9]  }
  0x4c   :  { %s260_s13 = scalar_lea.vmem %s109_s6, 128  ;;  %p265_p7 = scmp.lt.s32.totalorder %s109_s6, %s109_s6 }
  0x4d   :  { %p261_p6 = scmp.ne.s32.totalorder %s109_s6, %s260_s13  ;;  %p266_p8 = scmp.lt.s32.totalorder %s260_s13, %s260_s13 }
  0x4f   :  { %p267_p9 = por %p266_p8, %p265_p7 }
  0x51   :  { %p268_p10 = pnand %p267_p9, %p261_p6 }
  0x53   :  { %271 = shalt.err (!%p268_p10)
}
  0x54   :  { %111 = dma.vmem_to_hbm [thread:$0]  %s109_s6, 128, %s383_s2, [#allocation4]   ;;  %v66_v21 = vmax.f32 %v352_v0, 0.0  ;;  %v68_v22 = vmul.f32 %v52_v4, %v352_v0  ;;  %v67_v23 = vmax.f32 %v354_v1, 0.0  ;;  %v69_v24 = vmul.f32 %v358_v5, %v354_v1  ;;  %v177_v26 = vpop.eup %176 }
  0x55   :  { %v179_v28 = vpop.eup %178  ;;  %v79_v29 = vmul.f32 0.6931472, %v177_v26  ;;  %s315_s4 = smov [#allocation11]  }
  0x56   :  { %v70_v25 = vsub.f32 %v66_v21, %v68_v22  ;;  %v71_v27 = vsub.f32 %v67_v23, %v69_v24  ;;  %v81_v30 = vmul.f32 0.6931472, %v179_v28  ;;  %s138_s15 = sshll.u32 %s315_s4, 4  ;;  %s139_s15 = int_to_ptr.vmem [resolvable:$true] %s138_s15 }
  0x57   :  { %s280_s2 = scalar_lea.vmem %s139_s15, 128  ;;  %p285_p12 = scmp.lt.s32.totalorder %s139_s15, %s139_s15 }
  0x58   :  { %v82_v31 = vsub.f32 %v70_v25, %v79_v29  ;;  %v83_v32 = vsub.f32 %v71_v27, %v81_v30  ;;  %p281_p11 = scmp.ne.s32.totalorder %s139_s15, %s280_s2  ;;  %p286_p13 = scmp.lt.s32.totalorder %s280_s2, %s280_s2 }
  0x5a   :  { %v99_v33 = vadd.f32 %v83_v32, %v82_v31  ;;  %p287_p0 = por %p286_p13, %p285_p12 }
  0x5c   :  { %101 = vst [vmem:[#allocation11] sm:$0xff] %v99_v33  ;;  %p288_p1 = pnand %p287_p0, %p281_p11 }
  0x5e   :  { %291 = shalt.err (!%p288_p1)
}
  0x5f   :  { %141 = dma.vmem_to_hbm [thread:$0]  %s139_s15, 128, %s386_s5, [#allocation12]  }
  0x60   :  { %304 = dma.done.wait [#allocation4], 128  }
  0x61   :  { %305 = vsyncadd [#allocation4], 4294967168 }
  0x62   :  { %306 = dma.done.wait [#allocation9], 256  }
  0x63   :  { %307 = vsyncadd [#allocation9], 4294967040 }
  0x64   :  { %308 = dma.done.wait [#allocation12], 128  }
  0x65   :  { %309 = vsyncadd [#allocation12], 4294967168 }
  0x66   :  { %154 = vsyncpa [#allocation3], 1 }
  0x67   :  { %155 = vsyncpa [#allocation6], 1 }
  0x68   :  { %156 = vsyncpa [#allocation4], 1 }
  0x69   :  { %157 = vsyncpa [#allocation9], 1 }
  0x6a   :  { %158 = vsyncpa [#allocation12], 1 }

</bundles_post_ra>
